<compile_context>
chip_gen: v6e
topology: v6e:2x2x1
jax: 0.10.0
libtpu: 0.0.40
codegen_flags: <defaults>
</compile_context>

<pallas_src>
import functools

import jax
import jax.numpy as jnp
from jax.experimental import pallas as pl
from jax.experimental.pallas import tpu as pltpu

_SQRT_2_OVER_PI = 0.7978845608028654
_C1 = _SQRT_2_OVER_PI                     # sqrt(2/pi)
_C2 = _SQRT_2_OVER_PI * 0.044715          # folded at trace time


def _gelu_tanh_kernel(x_ref, o_ref):
    # 0.5 * x * (1 + tanh(sqrt(2/pi) * (x + 0.044715 * x^3)))
    # rewritten as hx + hx * tanh(x * (C1 + C2 * x^2))  -> ~7 VALU ops + 1 EUP.
    x = x_ref[...].astype(jnp.float32)
    u = x * x
    p = x * (jnp.float32(_C1) + jnp.float32(_C2) * u)
    t = jnp.tanh(p)
    hx = jnp.float32(0.5) * x
    o_ref[...] = (hx + hx * t).astype(o_ref.dtype)


def _gelu_tanh_jnp(x):
    """Plain-jnp tanh-approx GELU with f32 internal math (for tiny tails)."""
    xf = x.astype(jnp.float32)
    u = xf * xf
    p = xf * (jnp.float32(_C1) + jnp.float32(_C2) * u)
    hx = jnp.float32(0.5) * xf
    return (hx + hx * jnp.tanh(p)).astype(x.dtype)


def _round_up(a: int, b: int) -> int:
    return (a + b - 1) // b * b


@functools.lru_cache(maxsize=1)
def _chip_info():
    """(multi_tensorcore, block_budget_bytes, vmem_limit_bytes) for this chip."""
    try:
        kind = jax.devices()[0].device_kind.lower()
    except Exception:  # pragma: no cover - defensive
        kind = ""
    if "7" in kind:
        # v7x: 2 TensorCores per chip, 64 MiB VMEM -> modest blocks, >=4 steps.
        return True, 2 * 1024 * 1024, 32 * 1024 * 1024
    if "lite" in kind or "v5e" in kind or "v6e" in kind or "v6" in kind:
        # v5e / v6e: single TensorCore, 128 MiB VMEM -> big blocks, no split.
        return False, 8 * 1024 * 1024, 64 * 1024 * 1024
    if "v4" in kind or "v5p" in kind or "v5" in kind:
        # v4 / v5p megacore: 2 TCs, 128 MiB VMEM.
        return True, 8 * 1024 * 1024, 64 * 1024 * 1024
    # Unknown (incl. CPU interpret): conservative defaults.
    return True, 2 * 1024 * 1024, 32 * 1024 * 1024


def _pick_row_tile(rows: int, lanes: int, itemsize: int,
                   multi_tc: bool, budget_bytes: int) -> int:
    """Row-block height for a (rows, lanes) elementwise streaming kernel."""
    pack = max(8, 32 // itemsize)  # sublane packing: 8 (4B), 16 (2B), 32 (1B)
    if rows <= pack:
        return rows                # single full-array block (always legal)
    row_bytes = lanes * itemsize
    tr_budget = max(pack, (budget_bytes // row_bytes) // pack * pack)
    tr = tr_budget
    if multi_tc:
        # Target >= 4 grid steps (>= 2 per TensorCore) so both TCs pipeline,
        # but never shrink blocks below ~1 MiB.
        floor = max(pack, ((1 << 20) // row_bytes) // pack * pack)
        quarter = _round_up(pl.cdiv(rows, 4), pack)
        tr = min(tr_budget, max(floor, quarter))
    tr = min(tr, _round_up(rows, pack))
    if tr >= rows:
        tr = rows                  # block == full array: exempt from (8,128) rule
    return tr


def _gelu_tanh_2d(x2: jax.Array) -> jax.Array:
    """Run the Pallas kernel on a lane-dense (rows, lanes) view."""
    rows, lanes = x2.shape
    multi_tc, budget_bytes, vmem_limit = _chip_info()
    itemsize = jnp.dtype(x2.dtype).itemsize
    tr = _pick_row_tile(rows, lanes, itemsize, multi_tc, budget_bytes)
    grid = (pl.cdiv(rows, tr),)    # ragged last block handled by Pallas

    return pl.pallas_call(
        _gelu_tanh_kernel,
        out_shape=jax.ShapeDtypeStruct((rows, lanes), x2.dtype),
        grid_spec=pltpu.PrefetchScalarGridSpec(
            num_scalar_prefetch=0,
            grid=grid,
            in_specs=[pl.BlockSpec((tr, lanes), lambda i: (i, 0))],
            out_specs=pl.BlockSpec((tr, lanes), lambda i: (i, 0)),
        ),
        compiler_params=pltpu.CompilerParams(
            dimension_semantics=("parallel",),
            vmem_limit_bytes=vmem_limit,
        ),
    )(x2)


def _lanes_for(n: int) -> int:
    if n % 512 == 0:
        return 512
    if n % 256 == 0:
        return 256
    return 128


def gelu_tanh(x: jax.Array) -> jax.Array:
    """Elementwise tanh-approx GELU (== F.gelu(x, approximate='tanh'))."""
    if not jnp.issubdtype(x.dtype, jnp.floating):
        raise TypeError(f"gelu_tanh expects a floating dtype, got {x.dtype}")

    orig_shape = x.shape
    n = 1
    for d in orig_shape:
        n *= d
    if n == 0:
        return x

    flat = x.reshape(-1)
    n_tail = n % 128

    if n_tail == 0:
        # Zero-copy path: pick the widest lane-dense view that divides n.
        lanes = _lanes_for(n)
        out2 = _gelu_tanh_2d(flat.reshape(n // lanes, lanes))
        return out2.reshape(orig_shape)

    # Ragged total size: kernel on the 128-aligned prefix, tiny jnp tail.
    n_main = n - n_tail
    if n_main == 0:
        # Fewer than 128 elements total: not worth a kernel launch.
        return _gelu_tanh_jnp(x)

    lanes = _lanes_for(n_main)
    main_out = _gelu_tanh_2d(flat[:n_main].reshape(n_main // lanes, lanes))
    tail_out = _gelu_tanh_jnp(flat[n_main:])
    return jnp.concatenate([main_out.reshape(-1), tail_out]).reshape(orig_shape)


if __name__ == "__main__":
    key = jax.random.PRNGKey(0)

    # Small NCHW-style input (typical conv activation). n = 2048 -> 512 lanes,
    # fully zero-copy path.
    x = jax.random.normal(key, (2, 4, 16, 16), dtype=jnp.float32)
    y = gelu_tanh(x)
    jax.block_until_ready(y)

    y_ref = jax.nn.gelu(x, approximate=True)
    assert y.shape == x.shape and y.dtype == x.dtype
    assert jnp.allclose(y, y_ref, atol=1e-5, rtol=1e-5)

    # Ragged-total-size path (prefix kernel + tiny jnp tail).
    x2 = jax.random.normal(jax.random.PRNGKey(1), (5, 53), dtype=jnp.float32)
    y2 = gelu_tanh(x2)
    jax.block_until_ready(y2)
    assert y2.shape == x2.shape and y2.dtype == x2.dtype
    assert jnp.allclose(y2, jax.nn.gelu(x2, approximate=True), atol=1e-5, rtol=1e-5)

    print("KERNEL_OK")
</pallas_src>

<mosaic_0001>
module attributes {stable_mosaic.version = 11 : i64} {
  func.func @_gelu_tanh_kernel(%arg0: i32, %arg1: memref<4x512xf32, #tpu.memory_space<vmem>>, %arg2: memref<4x512xf32, #tpu.memory_space<vmem>>) attributes {dimension_semantics = [#tpu.dimension_semantics<parallel>], iteration_bounds = array<i64: 1>, scalar_prefetch = 0 : i64, scratch_operands = 0 : i64, tpu.core_type = #tpu.core_type<tc>, window_params = [{transform_indices = @transform_0, window_bounds = array<i64: 4, 512>}, {transform_indices = @transform_1, window_bounds = array<i64: 4, 512>}]} {
    %c0 = arith.constant 0 : index
    %c0_0 = arith.constant 0 : index
    %0 = vector.load %arg1[%c0, %c0_0] : memref<4x512xf32, #tpu.memory_space<vmem>>, vector<4x512xf32>
    %1 = arith.mulf %0, %0 : vector<4x512xf32>
    %cst = arith.constant 0.0356774069 : f32
    %2 = vector.broadcast %cst : f32 to vector<4x512xf32>
    %3 = arith.mulf %2, %1 : vector<4x512xf32>
    %cst_1 = arith.constant 0.797884583 : f32
    %4 = vector.broadcast %cst_1 : f32 to vector<4x512xf32>
    %5 = arith.addf %4, %3 : vector<4x512xf32>
    %6 = arith.mulf %0, %5 : vector<4x512xf32>
    %7 = math.tanh %6 : vector<4x512xf32>
    %cst_2 = arith.constant 5.000000e-01 : f32
    %8 = vector.broadcast %cst_2 : f32 to vector<4x512xf32>
    %9 = arith.mulf %8, %0 : vector<4x512xf32>
    %10 = arith.mulf %9, %7 : vector<4x512xf32>
    %11 = arith.addf %9, %10 : vector<4x512xf32>
    %c0_3 = arith.constant 0 : index
    %c0_4 = arith.constant 0 : index
    %12 = vector.load %arg2[%c0_3, %c0_4] : memref<4x512xf32, #tpu.memory_space<vmem>>, vector<4x512xf32>
    tpu.vector_store %arg2[%c0_3, %c0_4], %11 {strides = array<i32>} : memref<4x512xf32, #tpu.memory_space<vmem>>, vector<4x512xf32>,
    return
  }
  func.func @transform_0(%arg0: i32) -> (i32, i32) {
    %c0_i32 = arith.constant 0 : i32
    %c0_i32_0 = arith.constant 0 : i32
    return %arg0, %c0_i32 : i32, i32
  }
  func.func @transform_1(%arg0: i32) -> (i32, i32) {
    %c0_i32 = arith.constant 0 : i32
    %c0_i32_0 = arith.constant 0 : i32
    return %arg0, %c0_i32 : i32, i32
  }
}

</mosaic_0001>

<bundles_post_ra>
// kernel: tpu_custom_call.1
= control target key start
LH: loop header
LB: loop body
LE: loop exit
PB: predicated region body
PF: predicated region fallthrough
CT: control target
= control target key end

     0   :  { %6 = vsyncpa [#allocation3], 0  ;;  %s124_s0 = inlined_call_operand.hbm [shape: f32[4,512], index: 0, kind: input, shape index: {}]   ;;  %s125_s1 = inlined_call_operand.hbm [shape: f32[4,512], index: 1, kind: output, shape index: {}]  }
   0x1   :  { %7 = vsyncpa [#allocation4], 0  ;;  %s106_s6 = smov [#allocation2]  }
   0x2   :  { %s14_s7 = sshll.u32 %s106_s6, 4  ;;  %s15_s7 = int_to_ptr.vmem [resolvable:$true] %s14_s7 }
   0x3   :  { %s70_s8 = scalar_lea.vmem %s15_s7, 256  ;;  %p75_p1 = scmp.lt.s32.totalorder %s15_s7, %s15_s7 }
   0x4   :  { %p71_p0 = scmp.ne.s32.totalorder %s15_s7, %s70_s8  ;;  %p76_p2 = scmp.lt.s32.totalorder %s70_s8, %s70_s8 }
   0x6   :  { %p77_p3 = por %p76_p2, %p75_p1 }
   0x8   :  { %p78_p4 = pnand %p77_p3, %p71_p0 }
   0xa   :  { %81 = shalt.err (!%p78_p4)
}
   0xb   :  { %17 = dma.hbm_to_vmem [thread:$0]  %s124_s0, 256, %s15_s7, [#allocation3]  }
   0xc   :  { %102 = dma.done.wait [#allocation3], 256  }
   0xd   :  { %103 = vsyncadd [#allocation3], 4294967040  ;;  %v21_v0 = vld [vmem:[#allocation2] sm:$0xff]  ;;  %v22_v1 = vld [vmem:[#allocation2 + $0x8] sm:$0xff]  ;;  %s107_s0 = smov [#allocation5]  }
   0xe   :  { %v23_v2 = vmul.f32 %v21_v0, %v21_v0  ;;  %v24_v3 = vmul.f32 %v22_v1, %v22_v1  ;;  %v33_v10 = vmul.f32 0.5, %v21_v0  ;;  %v34_v11 = vmul.f32 0.5, %v22_v1  ;;  %s47_s11 = sshll.u32 %s107_s0, 4  ;;  %s48_s11 = int_to_ptr.vmem [resolvable:$true] %s47_s11 }
   0xf   :  { %s82_s12 = scalar_lea.vmem %s48_s11, 256  ;;  %p87_p6 = scmp.lt.s32.totalorder %s48_s11, %s48_s11 }
  0x10   :  { %v25_v4 = vmul.f32 0.035677407, %v23_v2  ;;  %v26_v5 = vmul.f32 0.035677407, %v24_v3  ;;  %p83_p5 = scmp.ne.s32.totalorder %s48_s11, %s82_s12  ;;  %p88_p7 = scmp.lt.s32.totalorder %s82_s12, %s82_s12 }
  0x12   :  { %v27_v6 = vadd.f32 0.7978846, %v25_v4  ;;  %v28_v7 = vadd.f32 0.7978846, %v26_v5  ;;  %p89_p8 = por %p88_p7, %p87_p6 }
  0x14   :  { %v29_v8 = vmul.f32 %v27_v6, %v21_v0  ;;  %v30_v9 = vmul.f32 %v28_v7, %v22_v1  ;;  %p90_p9 = pnand %p89_p8, %p83_p5 }
  0x16   :  { %58 = vtanh.f32 %v29_v8 }
  0x17   :  { %60 = vtanh.f32 %v30_v9 }
  0x23   :  { %v59_v12 = vpop.eup %58 }
  0x24   :  { %v61_v13 = vpop.eup %60  ;;  %v35_v14 = vmul.f32 %v59_v12, %v33_v10 }
  0x25   :  { %v36_v15 = vmul.f32 %v61_v13, %v34_v11 }
  0x26   :  { %v37_v16 = vadd.f32 %v35_v14, %v33_v10 }
  0x27   :  { %v38_v17 = vadd.f32 %v36_v15, %v34_v11 }
  0x28   :  { %39 = vst [vmem:[#allocation5] sm:$0xff] %v37_v16 }
  0x29   :  { %40 = vst [vmem:[#allocation5 + $0x8] sm:$0xff] %v38_v17 }
  0x2a   :  { %93 = shalt.err (!%p90_p9)
}
  0x2b   :  { %50 = dma.vmem_to_hbm [thread:$0]  %s48_s11, 256, %s125_s1, [#allocation4]  }
  0x2c   :  { %104 = dma.done.wait [#allocation4], 256  }
  0x2d   :  { %105 = vsyncadd [#allocation4], 4294967040 }
  0x2e   :  { %54 = vsyncpa [#allocation3], 1 }
  0x2f   :  { %55 = vsyncpa [#allocation4], 1 }

</bundles_post_ra>
